<compile_context>
chip_gen: v7x
topology: tpu7x:2x2x1
jax: 0.10.0
libtpu: 0.0.40
codegen_flags: <defaults>
</compile_context>

<pallas_src>
import math
import functools

import jax
import jax.numpy as jnp
from jax import lax
from jax.experimental import pallas as pl
from jax.experimental.pallas import tpu as pltpu

_NEG_INF = -1e30  # large finite negative: avoids NaN if a row were fully masked


# ---------------------------------------------------------------------------
# helpers
# ---------------------------------------------------------------------------
def _layernorm(x, w, b, eps=1e-5):
    mu = jnp.mean(x, axis=-1, keepdims=True)
    var = jnp.mean((x - mu) ** 2, axis=-1, keepdims=True)
    return (x - mu) * jax.lax.rsqrt(var + eps) * w + b


def _gelu_tanh(x):
    # TODO(synk): PyTorch nn.GELU() defaults to exact erf; the tanh form
    # (max abs dev ~1e-3) routes through the EUP tanh slot instead of ~12 VPU
    # ops per element of the (tq, 4D) activation.
    c = math.sqrt(2.0 / math.pi)
    return 0.5 * x * (1.0 + jnp.tanh(c * (x + 0.044715 * x * x * x)))


def _device_kind():
    try:
        return jax.devices()[0].device_kind.lower()
    except Exception:
        return ""


def _use_bf16_exp():
    # bf16 EUP exists on v6e / v7x; keep f32 exp on v5e / unknown parts.
    k = _device_kind()
    return any(tag in k for tag in ("v6", "v7", "7x"))


def _vmem_limit_bytes():
    # Generation-aware scoped-VMEM limit: ~3/4 of physical, capped at 96 MiB
    # (v5e/v6e: 96 of 128 MiB; v7x: 48 of 64 MiB). Conservative fallback.
    try:
        cap = int(pltpu.get_tpu_info().vmem_capacity_bytes)
        return int(min(cap * 3 // 4, 96 * 1024 * 1024))
    except Exception:
        return 48 * 1024 * 1024


# ---------------------------------------------------------------------------
# Kernel A: ln_1 + fused QKV projection.
#   x_ref:   (ts, D)   f32 (one seq tile of one batch, read straight from x)
#   outputs: xn (1, ts, D) f32; q/k/v (1, ts, D) bf16 in batch-major layout.
# ---------------------------------------------------------------------------
def ln_qkv_kernel(x_ref, ln1w_ref, ln1b_ref, wqkv_ref, bqkv_ref,
                  xn_ref, q_ref, k_ref, v_ref, *, num_heads):
    x = x_ref[...].astype(jnp.float32)                    # (ts, D)
    D = x.shape[-1]
    scale = 1.0 / math.sqrt(D // num_heads)

    xn = _layernorm(x, ln1w_ref[...], ln1b_ref[...])      # f32 (residual path)
    xn_ref[0] = xn.astype(xn_ref.dtype)

    qkv = jnp.dot(xn.astype(jnp.bfloat16), wqkv_ref[...],
                  preferred_element_type=jnp.float32) + bqkv_ref[...]
    q_ref[0] = (qkv[:, :D] * scale).astype(q_ref.dtype)   # pre-scaled query
    k_ref[0] = qkv[:, D:2 * D].astype(k_ref.dtype)
    v_ref[0] = qkv[:, 2 * D:].astype(v_ref.dtype)


# ---------------------------------------------------------------------------
# Kernel B: causal flash attention + out-proj + residual + ln_2 + MLP.
# grid = (B, num_q_tiles, num_kv_tiles); kv axis is the innermost reduction.
# ---------------------------------------------------------------------------
def attn_mlp_kernel(xn_ref, q_ref, k_ref, v_ref,
                    wo_ref, bo_ref, ln2w_ref, ln2b_ref,
                    w1_ref, b1_ref, w2_ref, b2_ref,
                    o_ref, m_scr, l_scr, acc_scr, *, num_heads, use_bf16_exp):
    qi = pl.program_id(1)
    ki = pl.program_id(2)
    tq = q_ref.shape[1]
    tkv = k_ref.shape[1]
    D = q_ref.shape[2]
    hd = D // num_heads

    @pl.when(ki == 0)
    def _init():
        m_scr[...] = jnp.full_like(m_scr, _NEG_INF)
        l_scr[...] = jnp.zeros_like(l_scr)
        acc_scr[...] = jnp.zeros_like(acc_scr)

    def accum(apply_mask):
        q = q_ref[0]                                       # (tq, D)  bf16
        k = k_ref[0]                                       # (tkv, D) bf16
        v = v_ref[0]                                       # (tkv, D) bf16

        if apply_mask:  # only built on the diagonal tile
            row = qi * tq + lax.broadcasted_iota(jnp.int32, (tq, tkv), 0)
            col = ki * tkv + lax.broadcasted_iota(jnp.int32, (tq, tkv), 1)
            causal = col <= row

        for h in range(num_heads):                         # static unroll
            sl = slice(h * hd, (h + 1) * hd)
            s = lax.dot_general(q[:, sl], k[:, sl],
                                (((1,), (1,)), ((), ())),
                                preferred_element_type=jnp.float32)  # (tq, tkv)
            if apply_mask:
                s = jnp.where(causal, s, _NEG_INF)

            m_prev = m_scr[:, h:h + 1]                     # (tq, 1) f32
            m_new = jnp.maximum(m_prev, jnp.max(s, axis=-1, keepdims=True))
            alpha = jnp.exp(m_prev - m_new)                # f32, tiny

            if use_bf16_exp:                               # v6e / v7x EUP path
                p_mx = jnp.exp((s - m_new).astype(jnp.bfloat16))
                p_sum = jnp.sum(p_mx.astype(jnp.float32), axis=-1, keepdims=True)
            else:                                          # v5e / unknown
                p32 = jnp.exp(s - m_new)
                p_sum = jnp.sum(p32, axis=-1, keepdims=True)
                p_mx = p32.astype(jnp.bfloat16)

            l_scr[:, h:h + 1] = alpha * l_scr[:, h:h + 1] + p_sum
            acc_scr[:, sl] = alpha * acc_scr[:, sl] + jnp.dot(
                p_mx, v[:, sl], preferred_element_type=jnp.float32)
            m_scr[:, h:h + 1] = m_new

    # Causal tile classification: strictly-below-diagonal tiles need no mask;
    # only the diagonal tile builds/applies the element mask; above-diagonal
    # tiles are skipped entirely (their K/V DMA is also suppressed via the
    # clamped index_map on the wrapper side).
    strictly_below = (ki + 1) * tkv <= qi * tq
    on_diag = jnp.logical_and(ki * tkv < (qi + 1) * tq,
                              jnp.logical_not(strictly_below))

    @pl.when(strictly_below)
    def _below():
        accum(False)

    @pl.when(on_diag)
    def _diag():
        accum(True)

    @pl.when(ki == pl.num_programs(2) - 1)
    def _finalize():
        # per-head normalization in place (lane-packed accumulator, no concat)
        for h in range(num_heads):
            sl = slice(h * hd, (h + 1) * hd)
            acc_scr[:, sl] = acc_scr[:, sl] * pl.reciprocal(
                l_scr[:, h:h + 1], approx=True)
        ctx = acc_scr[...]                                 # (tq, D) f32

        a = jnp.dot(ctx.astype(jnp.bfloat16), wo_ref[...],
                    preferred_element_type=jnp.float32) + bo_ref[...]

        # residual added to the *normalized* x, exactly like the reference
        x1 = xn_ref[0] + a

        xn2 = _layernorm(x1, ln2w_ref[...], ln2b_ref[...])
        h1 = jnp.dot(xn2.astype(jnp.bfloat16), w1_ref[...],
                     preferred_element_type=jnp.float32) + b1_ref[...]
        h1 = _gelu_tanh(h1)
        m_out = jnp.dot(h1.astype(jnp.bfloat16), w2_ref[...],
                        preferred_element_type=jnp.float32) + b2_ref[...]

        o_ref[...] = (x1 + m_out).astype(o_ref.dtype)


# ---------------------------------------------------------------------------
# Wrapper
# ---------------------------------------------------------------------------
def transformer_block(x_sbd, params, num_heads, *, ts=None, tq=None, tkv=None):
    """x_sbd: (S, B, D) float32 — same axis convention as the PyTorch module."""
    S, B, D = x_sbd.shape
    assert D % num_heads == 0
    ts = ts or min(S, 256)
    tq = tq or min(S, 256)
    tkv = tkv or min(S, 256)
    assert S % ts == 0 and S % tq == 0 and S % tkv == 0

    vmem_limit = _vmem_limit_bytes()
    use_bf16_exp = _use_bf16_exp()

    # bf16 weights for the MXU; biases & LayerNorm parameters stay f32.
    wqkv = params["wqkv_t"].astype(jnp.bfloat16)
    wo = params["wo_t"].astype(jnp.bfloat16)
    w1 = params["w1_t"].astype(jnp.bfloat16)
    w2 = params["w2_t"].astype(jnp.bfloat16)

    # Layout folding: view (S, B, D) as (S, B*D) (free reshape) and address
    # batch b as lane block b of width D — no wrapper transposes needed.
    # Requires D % 128 == 0 (lane-aligned per-batch slice) or B == 1.
    fold = (D % 128 == 0) or (B == 1)
    if fold:
        x2 = x_sbd.reshape(S, B * D)
        a_x_spec = pl.BlockSpec((ts, D), lambda b, i: (i, b))
        b_out_spec = pl.BlockSpec((tq, D), lambda b, i, j: (i, b))
        out2_shape = (S, B * D)
    else:
        # TODO(synk): fallback pays two extra HBM passes (transpose in/out);
        # keep D a multiple of 128 upstream to stay on the transpose-free path.
        x2 = jnp.transpose(x_sbd, (1, 0, 2)).reshape(B * S, D)
        nts, ntq = S // ts, S // tq
        a_x_spec = pl.BlockSpec((ts, D), lambda b, i, n=nts: (b * n + i, 0))
        b_out_spec = pl.BlockSpec((tq, D), lambda b, i, j, n=ntq: (b * n + i, 0))
        out2_shape = (B * S, D)

    def const_spec(arr):
        # Grid-invariant (weights / biases / LN params): single-buffered so the
        # pipeline does not waste a second VMEM copy on never-refetched data.
        nd = arr.ndim
        return pl.BlockSpec(arr.shape, lambda *_, nd=nd: (0,) * nd,
                            pipeline_mode=pl.Buffered(1))

    # ---- kernel A: ln_1 + QKV projection ------------------------------------
    a_weights = (params["ln1_w"], params["ln1_b"], wqkv, params["bqkv"])
    xn, q, k, v = pl.pallas_call(
        functools.partial(ln_qkv_kernel, num_heads=num_heads),
        out_shape=(
            jax.ShapeDtypeStruct((B, S, D), jnp.float32),
            jax.ShapeDtypeStruct((B, S, D), jnp.bfloat16),
            jax.ShapeDtypeStruct((B, S, D), jnp.bfloat16),
            jax.ShapeDtypeStruct((B, S, D), jnp.bfloat16),
        ),
        grid_spec=pltpu.PrefetchScalarGridSpec(
            num_scalar_prefetch=0,
            grid=(B, S // ts),
            in_specs=[a_x_spec] + [const_spec(w) for w in a_weights],
            out_specs=[pl.BlockSpec((1, ts, D), lambda b, i: (b, i, 0))
                       for _ in range(4)],
        ),
        compiler_params=pltpu.CompilerParams(
            dimension_semantics=("parallel", "parallel"),
            vmem_limit_bytes=vmem_limit),
        cost_estimate=pl.CostEstimate(
            flops=int(2 * B * S * D * 3 * D),
            transcendentals=0,
            bytes_accessed=int(B * S * D * 4 + B * S * D * (4 + 3 * 2)
                               + 3 * D * D * 2 + 7 * D * 4)),
    )(x2, *a_weights)

    # ---- kernel B: causal flash attention + out proj + MLP ------------------
    b_weights = (wo, params["bo"], params["ln2_w"], params["ln2_b"],
                 w1, params["b1"], w2, params["b2"])
    nq, nk = S // tq, S // tkv

    def kv_index(b, i, j):
        # Clamp above-diagonal kv blocks to the last contributing block so
        # skipped steps reuse the resident buffer (no wasted K/V DMA).
        last = ((i + 1) * tq - 1) // tkv
        return (b, jnp.minimum(j, last), 0)

    flops_b = int(B * (2 * S * S * D            # QK^T + PV
                       + 2 * S * D * D          # output projection
                       + 16 * S * D * D))       # MLP (two 4x linears)
    out2 = pl.pallas_call(
        functools.partial(attn_mlp_kernel, num_heads=num_heads,
                          use_bf16_exp=use_bf16_exp),
        out_shape=jax.ShapeDtypeStruct(out2_shape, x_sbd.dtype),
        grid_spec=pltpu.PrefetchScalarGridSpec(
            num_scalar_prefetch=0,
            grid=(B, nq, nk),
            in_specs=[
                pl.BlockSpec((1, tq, D), lambda b, i, j: (b, i, 0)),    # xn
                pl.BlockSpec((1, tq, D), lambda b, i, j: (b, i, 0)),    # q
                pl.BlockSpec((1, tkv, D), kv_index),                    # k
                pl.BlockSpec((1, tkv, D), kv_index),                    # v
            ] + [const_spec(w) for w in b_weights],
            out_specs=b_out_spec,
            scratch_shapes=[
                pltpu.VMEM((tq, num_heads), jnp.float32),   # running max
                pltpu.VMEM((tq, num_heads), jnp.float32),   # running sum
                pltpu.VMEM((tq, D), jnp.float32),           # lane-packed accum
            ]),
        compiler_params=pltpu.CompilerParams(
            dimension_semantics=("parallel", "parallel", "arbitrary"),
            vmem_limit_bytes=vmem_limit),
        cost_estimate=pl.CostEstimate(
            flops=flops_b,
            transcendentals=int(B * num_heads * S * S // 2 + B * S * 4 * D),
            bytes_accessed=int(B * S * D * (4 + 2 + 4)
                               + B * S * D * 2 * 2 * max(nq, 1)
                               + 11 * D * D * 2 + 16 * D * 4)),
    )(xn, q, k, v, *b_weights)

    if fold:
        return out2.reshape(S, B, D)
    return jnp.transpose(out2.reshape(B, S, D), (1, 0, 2))


# ---------------------------------------------------------------------------
# Params / reference / test
# ---------------------------------------------------------------------------
def init_params(key, dim):
    ks = jax.random.split(key, 8)
    scale = 0.02

    def rnd(k, shape):
        return scale * jax.random.normal(k, shape, jnp.float32)

    # PyTorch-layout weights (out_features, in_features); transposed for kernel.
    wqkv = rnd(ks[0], (3 * dim, dim))
    wo = rnd(ks[1], (dim, dim))
    w1 = rnd(ks[2], (4 * dim, dim))
    w2 = rnd(ks[3], (dim, 4 * dim))
    bqkv = rnd(ks[4], (3 * dim,))
    bo = rnd(ks[5], (dim,))
    b1 = rnd(ks[6], (4 * dim,))
    b2 = rnd(ks[7], (dim,))

    return dict(
        ln1_w=jnp.ones((1, dim), jnp.float32),
        ln1_b=jnp.zeros((1, dim), jnp.float32),
        ln2_w=jnp.ones((1, dim), jnp.float32),
        ln2_b=jnp.zeros((1, dim), jnp.float32),
        wqkv_t=wqkv.T, bqkv=bqkv.reshape(1, -1),
        wo_t=wo.T, bo=bo.reshape(1, -1),
        w1_t=w1.T, b1=b1.reshape(1, -1),
        w2_t=w2.T, b2=b2.reshape(1, -1),
    )


def _reference(x_sbd, params, num_heads):
    # Pure-JAX f32 reference (sanity check of the bf16 kernel).
    S, B, D = x_sbd.shape
    hd = D // num_heads

    def ln(x, w, b):
        mu = jnp.mean(x, -1, keepdims=True)
        var = jnp.mean((x - mu) ** 2, -1, keepdims=True)
        return (x - mu) * jax.lax.rsqrt(var + 1e-5) * w + b

    def one_batch(x):                                     # x: (S, D)
        xn = ln(x, params["ln1_w"], params["ln1_b"])
        qkv = xn @ params["wqkv_t"] + params["bqkv"]
        q, k, v = qkv[:, :D], qkv[:, D:2 * D], qkv[:, 2 * D:]
        mask = jnp.tril(jnp.ones((S, S), bool))
        outs = []
        for h in range(num_heads):
            sl = slice(h * hd, (h + 1) * hd)
            s = (q[:, sl] / math.sqrt(hd)) @ k[:, sl].T
            s = jnp.where(mask, s, -jnp.inf)
            p = jax.nn.softmax(s, axis=-1)
            outs.append(p @ v[:, sl])
        a = jnp.concatenate(outs, -1) @ params["wo_t"] + params["bo"]
        x1 = xn + a
        xn2 = ln(x1, params["ln2_w"], params["ln2_b"])
        h1 = jax.nn.gelu(xn2 @ params["w1_t"] + params["b1"], approximate=False)
        return x1 + (h1 @ params["w2_t"] + params["b2"])

    return jnp.stack([one_batch(x_sbd[:, b]) for b in range(B)], axis=1)


if __name__ == "__main__":
    # Small but multi-tile: S=32 with 16-wide tiles exercises the causal tile
    # skip, the diagonal-only mask, the clamped K/V DMA and init/finalize.
    # D=128 keeps the transpose-free (lane-folded) layout path active.
    S, B, D, H = 32, 2, 128, 4
    key = jax.random.PRNGKey(0)
    kx, kp = jax.random.split(key)
    x = jax.random.normal(kx, (S, B, D), jnp.float32)
    params = init_params(kp, D)

    out = transformer_block(x, params, H, ts=16, tq=16, tkv=16)
    out = jax.block_until_ready(out)
    assert out.shape == (S, B, D)
    assert bool(jnp.all(jnp.isfinite(out)))

    ref = _reference(x, params, H)
    err = float(jnp.max(jnp.abs(out - ref)))
    assert err < 2e-2, f"mismatch vs pure-JAX reference: {err}"

    print("KERNEL_OK")
</pallas_src>

<mosaic_0001>
module attributes {stable_mosaic.version = 11 : i64} {
  func.func @ln_qkv_kernel(%arg0: i32, %arg1: i32, %arg2: memref<16x128xf32, #tpu.memory_space<vmem>>, %arg3: memref<1x128xf32, #tpu.memory_space<vmem>>, %arg4: memref<1x128xf32, #tpu.memory_space<vmem>>, %arg5: memref<128x384xbf16, #tpu.memory_space<vmem>>, %arg6: memref<1x384xf32, #tpu.memory_space<vmem>>, %arg7: memref<1x16x128xf32, #tpu.memory_space<vmem>>, %arg8: memref<1x16x128xbf16, #tpu.memory_space<vmem>>, %arg9: memref<1x16x128xbf16, #tpu.memory_space<vmem>>, %arg10: memref<1x16x128xbf16, #tpu.memory_space<vmem>>) attributes {dimension_semantics = [#tpu.dimension_semantics<parallel>, #tpu.dimension_semantics<parallel>], iteration_bounds = array<i64: 2, 2>, scalar_prefetch = 0 : i64, scratch_operands = 0 : i64, tpu.core_type = #tpu.core_type<tc>, window_params = [{transform_indices = @transform_0, window_bounds = array<i64: 16, 128>}, {pipeline_mode = #tpu.pipeline_mode<synchronous>, transform_indices = @transform_1, window_bounds = array<i64: 1, 128>}, {pipeline_mode = #tpu.pipeline_mode<synchronous>, transform_indices = @transform_2, window_bounds = array<i64: 1, 128>}, {pipeline_mode = #tpu.pipeline_mode<synchronous>, transform_indices = @transform_3, window_bounds = array<i64: 128, 384>}, {pipeline_mode = #tpu.pipeline_mode<synchronous>, transform_indices = @transform_4, window_bounds = array<i64: 1, 384>}, {transform_indices = @transform_5, window_bounds = array<i64: 1, 16, 128>}, {transform_indices = @transform_6, window_bounds = array<i64: 1, 16, 128>}, {transform_indices = @transform_7, window_bounds = array<i64: 1, 16, 128>}, {transform_indices = @transform_8, window_bounds = array<i64: 1, 16, 128>}]} {
    %c0 = arith.constant 0 : index
    %c0_0 = arith.constant 0 : index
    %0 = vector.load %arg2[%c0, %c0_0] : memref<16x128xf32, #tpu.memory_space<vmem>>, vector<16x128xf32>
    %c0_1 = arith.constant 0 : index
    %c0_2 = arith.constant 0 : index
    %1 = vector.load %arg3[%c0_1, %c0_2] : memref<1x128xf32, #tpu.memory_space<vmem>>, vector<1x128xf32>
    %c0_3 = arith.constant 0 : index
    %c0_4 = arith.constant 0 : index
    %2 = vector.load %arg4[%c0_3, %c0_4] : memref<1x128xf32, #tpu.memory_space<vmem>>, vector<1x128xf32>
    %cst = arith.constant dense<0.000000e+00> : vector<16xf32>
    %3 = vector.multi_reduction <add>, %0, %cst [1] : vector<16x128xf32> to vector<16xf32>
    %4 = vector.shape_cast %3 : vector<16xf32> to vector<16x1xf32>
    %cst_5 = arith.constant 1.280000e+02 : f32
    %5 = vector.broadcast %cst_5 : f32 to vector<16x1xf32>
    %6 = arith.divf %4, %5 : vector<16x1xf32>
    %7 = vector.broadcast %6 : vector<16x1xf32> to vector<16x128xf32>
    %8 = arith.subf %0, %7 : vector<16x128xf32>
    %9 = arith.mulf %8, %8 : vector<16x128xf32>
    %cst_6 = arith.constant dense<0.000000e+00> : vector<16xf32>
    %10 = vector.multi_reduction <add>, %9, %cst_6 [1] : vector<16x128xf32> to vector<16xf32>
    %11 = vector.shape_cast %10 : vector<16xf32> to vector<16x1xf32>
    %cst_7 = arith.constant 1.280000e+02 : f32
    %12 = vector.broadcast %cst_7 : f32 to vector<16x1xf32>
    %13 = arith.divf %11, %12 : vector<16x1xf32>
    %14 = vector.broadcast %6 : vector<16x1xf32> to vector<16x128xf32>
    %15 = arith.subf %0, %14 : vector<16x128xf32>
    %cst_8 = arith.constant 9.99999974E-6 : f32
    %16 = vector.broadcast %cst_8 : f32 to vector<16x1xf32>
    %17 = arith.addf %13, %16 : vector<16x1xf32>
    %18 = math.rsqrt %17 : vector<16x1xf32>
    %19 = vector.broadcast %18 : vector<16x1xf32> to vector<16x128xf32>
    %20 = arith.mulf %15, %19 : vector<16x128xf32>
    %21 = vector.broadcast %1 : vector<1x128xf32> to vector<16x128xf32>
    %22 = arith.mulf %20, %21 : vector<16x128xf32>
    %23 = vector.broadcast %2 : vector<1x128xf32> to vector<16x128xf32>
    %24 = arith.addf %22, %23 : vector<16x128xf32>
    %c0_9 = arith.constant 0 : index
    %c0_10 = arith.constant 0 : index
    %c0_11 = arith.constant 0 : index
    %25 = vector.load %arg7[%c0_9, %c0_10, %c0_11] : memref<1x16x128xf32, #tpu.memory_space<vmem>>, vector<1x16x128xf32>
    %26 = vector.shape_cast %25 : vector<1x16x128xf32> to vector<16x128xf32>
    %27 = vector.shape_cast %24 : vector<16x128xf32> to vector<1x16x128xf32>
    tpu.vector_store %arg7[%c0_9, %c0_10, %c0_11], %27 {strides = array<i32>} : memref<1x16x128xf32, #tpu.memory_space<vmem>>, vector<1x16x128xf32>,
    %28 = arith.truncf %24 : vector<16x128xf32> to vector<16x128xbf16>
    %c0_12 = arith.constant 0 : index
    %c0_13 = arith.constant 0 : index
    %29 = vector.load %arg5[%c0_12, %c0_13] : memref<128x384xbf16, #tpu.memory_space<vmem>>, vector<128x384xbf16>
    %cst_14 = arith.constant dense<0.000000e+00> : vector<16x384xf32>
    %30 = tpu.matmul %28, %29, %cst_14 {dimension_numbers = #tpu.dot_dimension_numbers<[1], [0], [0], [1], [0, 0, 1, 1], [], []>} : vector<16x128xbf16>, vector<128x384xbf16>, vector<16x384xf32> -> vector<16x384xf32>
    %c0_15 = arith.constant 0 : index
    %c0_16 = arith.constant 0 : index
    %31 = vector.load %arg6[%c0_15, %c0_16] : memref<1x384xf32, #tpu.memory_space<vmem>>, vector<1x384xf32>
    %32 = vector.broadcast %31 : vector<1x384xf32> to vector<16x384xf32>
    %33 = arith.addf %30, %32 : vector<16x384xf32>
    %34 = vector.extract_strided_slice %33 {offsets = [0, 0], sizes = [16, 128], strides = [1, 1]} : vector<16x384xf32> to vector<16x128xf32>
    %cst_17 = arith.constant 0.176776692 : f32
    %35 = vector.broadcast %cst_17 : f32 to vector<16x128xf32>
    %36 = arith.mulf %34, %35 : vector<16x128xf32>
    %37 = arith.truncf %36 : vector<16x128xf32> to vector<16x128xbf16>
    %c0_18 = arith.constant 0 : index
    %c0_19 = arith.constant 0 : index
    %c0_20 = arith.constant 0 : index
    %38 = vector.load %arg8[%c0_18, %c0_19, %c0_20] : memref<1x16x128xbf16, #tpu.memory_space<vmem>>, vector<1x16x128xbf16>
    %39 = vector.shape_cast %38 : vector<1x16x128xbf16> to vector<16x128xbf16>
    %40 = vector.shape_cast %37 : vector<16x128xbf16> to vector<1x16x128xbf16>
    tpu.vector_store %arg8[%c0_18, %c0_19, %c0_20], %40 {strides = array<i32>} : memref<1x16x128xbf16, #tpu.memory_space<vmem>>, vector<1x16x128xbf16>,
    %41 = vector.extract_strided_slice %33 {offsets = [0, 128], sizes = [16, 128], strides = [1, 1]} : vector<16x384xf32> to vector<16x128xf32>
    %42 = arith.truncf %41 : vector<16x128xf32> to vector<16x128xbf16>
    %c0_21 = arith.constant 0 : index
    %c0_22 = arith.constant 0 : index
    %c0_23 = arith.constant 0 : index
    %43 = vector.load %arg9[%c0_21, %c0_22, %c0_23] : memref<1x16x128xbf16, #tpu.memory_space<vmem>>, vector<1x16x128xbf16>
    %44 = vector.shape_cast %43 : vector<1x16x128xbf16> to vector<16x128xbf16>
    %45 = vector.shape_cast %42 : vector<16x128xbf16> to vector<1x16x128xbf16>
    tpu.vector_store %arg9[%c0_21, %c0_22, %c0_23], %45 {strides = array<i32>} : memref<1x16x128xbf16, #tpu.memory_space<vmem>>, vector<1x16x128xbf16>,
    %46 = vector.extract_strided_slice %33 {offsets = [0, 256], sizes = [16, 128], strides = [1, 1]} : vector<16x384xf32> to vector<16x128xf32>
    %47 = arith.truncf %46 : vector<16x128xf32> to vector<16x128xbf16>
    %c0_24 = arith.constant 0 : index
    %c0_25 = arith.constant 0 : index
    %c0_26 = arith.constant 0 : index
    %48 = vector.load %arg10[%c0_24, %c0_25, %c0_26] : memref<1x16x128xbf16, #tpu.memory_space<vmem>>, vector<1x16x128xbf16>
    %49 = vector.shape_cast %48 : vector<1x16x128xbf16> to vector<16x128xbf16>
    %50 = vector.shape_cast %47 : vector<16x128xbf16> to vector<1x16x128xbf16>
    tpu.vector_store %arg10[%c0_24, %c0_25, %c0_26], %50 {strides = array<i32>} : memref<1x16x128xbf16, #tpu.memory_space<vmem>>, vector<1x16x128xbf16>,
    return
  }
  func.func @transform_0(%arg0: i32, %arg1: i32) -> (i32, i32) {
    %c0_i32 = arith.constant 0 : i32
    return %arg1, %arg0 : i32, i32
  }
  func.func @transform_1(%arg0: i32, %arg1: i32) -> (i32, i32) {
    %c0_i32 = arith.constant 0 : i32
    %c0_i32_0 = arith.constant 0 : i32
    %c0_i32_1 = arith.constant 0 : i32
    return %c0_i32, %c0_i32_0 : i32, i32
  }
  func.func @transform_2(%arg0: i32, %arg1: i32) -> (i32, i32) {
    %c0_i32 = arith.constant 0 : i32
    %c0_i32_0 = arith.constant 0 : i32
    %c0_i32_1 = arith.constant 0 : i32
    return %c0_i32, %c0_i32_0 : i32, i32
  }
  func.func @transform_3(%arg0: i32, %arg1: i32) -> (i32, i32) {
    %c0_i32 = arith.constant 0 : i32
    %c0_i32_0 = arith.constant 0 : i32
    %c0_i32_1 = arith.constant 0 : i32
    return %c0_i32, %c0_i32_0 : i32, i32
  }
  func.func @transform_4(%arg0: i32, %arg1: i32) -> (i32, i32) {
    %c0_i32 = arith.constant 0 : i32
    %c0_i32_0 = arith.constant 0 : i32
    %c0_i32_1 = arith.constant 0 : i32
    return %c0_i32, %c0_i32_0 : i32, i32
  }
  func.func @transform_5(%arg0: i32, %arg1: i32) -> (i32, i32, i32) {
    %c0_i32 = arith.constant 0 : i32
    %c0_i32_0 = arith.constant 0 : i32
    return %arg0, %arg1, %c0_i32 : i32, i32, i32
  }
  func.func @transform_6(%arg0: i32, %arg1: i32) -> (i32, i32, i32) {
    %c0_i32 = arith.constant 0 : i32
    %c0_i32_0 = arith.constant 0 : i32
    return %arg0, %arg1, %c0_i32 : i32, i32, i32
  }
  func.func @transform_7(%arg0: i32, %arg1: i32) -> (i32, i32, i32) {
    %c0_i32 = arith.constant 0 : i32
    %c0_i32_0 = arith.constant 0 : i32
    return %arg0, %arg1, %c0_i32 : i32, i32, i32
  }
  func.func @transform_8(%arg0: i32, %arg1: i32) -> (i32, i32, i32) {
    %c0_i32 = arith.constant 0 : i32
    %c0_i32_0 = arith.constant 0 : i32
    return %arg0, %arg1, %c0_i32 : i32, i32, i32
  }
}

</mosaic_0001>

<bundles_post_ra>
// kernel: tpu_custom_call.1
= control target key start
LH: loop header
LB: loop body
LE: loop exit
PB: predicated region body
PF: predicated region fallthrough
CT: control target
= control target key end

     0   :  { %s1998_s0 = inlined_call_operand.hbm [shape: f32[32,256], index: 0, kind: input, shape index: {}]   ;;  %s1999_s1 = inlined_call_operand.vmem [shape: f32[1,128], index: 1, kind: input, shape index: {}]   ;;  %s2000_s2 = inlined_call_operand.vmem [shape: f32[1,128], index: 2, kind: input, shape index: {}]   ;;  %s2001_s3 = inlined_call_operand.hbm [shape: bf16[128,384], index: 3, kind: input, shape index: {}]   ;;  %s2002_s4 = inlined_call_operand.vmem [shape: f32[1,384], index: 4, kind: input, shape index: {}]   ;;  %s2003_s5 = inlined_call_operand.hbm [shape: f32[2,32,128], index: 5, kind: output, shape index: {0}]   ;;  %s2004_s6 = inlined_call_operand.hbm [shape: bf16[2,32,128], index: 6, kind: output, shape index: {1}]   ;;  %s2005_s7 = inlined_call_operand.hbm [shape: bf16[2,32,128], index: 7, kind: output, shape index: {2}]   ;;  %s2006_s8 = inlined_call_operand.hbm [shape: bf16[2,32,128], index: 8, kind: output, shape index: {3}]  }
   0x1   :  { %2022 = sst [smem:[#allocation23_spill]] %s1998_s0 }
   0x2   :  { %2023 = sst [smem:[#allocation24_spill]] %s1999_s1 }
   0x3   :  { %2024 = sst [smem:[#allocation25_spill]] %s2000_s2 }
   0x4   :  { %2025 = sst [smem:[#allocation26_spill]] %s2001_s3 }
   0x5   :  { %2026 = sst [smem:[#allocation27_spill]] %s2002_s4 }
   0x6   :  { %2027 = sst [smem:[#allocation28_spill]] %s2004_s6 }
   0x7   :  { %2028 = sst [smem:[#allocation29_spill]] %s2005_s7 }
   0x8   :  { %14 = vsyncpa [#allocation3], 0 }
   0x9   :  { %16 = vsyncpa [#allocation3 + $0x1], 0 }
   0xa   :  { %17 = vsyncpa [#allocation6], 0 }
   0xb   :  { %18 = vsyncpa [#allocation4], 0 }
   0xc   :  { %20 = vsyncpa [#allocation4 + $0x1], 0 }
   0xd   :  { %21 = vsyncpa [#allocation9], 0 }
   0xe   :  { %23 = vsyncpa [#allocation9 + $0x1], 0 }
   0xf   :  { %24 = vsyncpa [#allocation12], 0 }
  0x10   :  { %26 = vsyncpa [#allocation12 + $0x1], 0  ;;  %s1608_s27 = smov 0   ;;  %s1610_s28 = smov 0  }
  0x11   :  { %s1612_s29 = smov 0   ;;  %s1614_s30 = smov 0  }
  0x12   :  { %s1616_s9 = smov 0   ;;  %s1618_s10 = smov 0  }
  0x13   :  { %s1620_s11 = smov 0   ;;  %s1622_s12 = smov 0  }
  0x14 LB: > { %2029 = sst [smem:[#allocation18_spill]] %s1515_s27  ;;  %s1649_s13 = sadd.s32 4294967295, %s1543_s12   ;;  %s1543_s12 = sphi %s1622_s12, %s32_s12   ;;  %s1539_s11 = sphi %s1620_s11, %s2070_s11   ;;  %s1535_s10 = sphi %s1618_s10, %s2069_s10   ;;  %s1531_s9 = sphi %s1616_s9, %s2068_s9   ;;  %s1527_s30 = sphi %s1614_s30, %s2063_s30   ;;  %s1523_s29 = sphi %s1612_s29, %s2067_s29   ;;  %s1519_s28 = sphi %s1610_s28, %s2066_s28   ;;  %s1515_s27 = sphi %s1608_s27, %s2065_s27  }
  0x15   : > { %2030 = sst [smem:[#allocation19_spill]] %s1535_s10  ;;  %s2007_s14 = sadd.s32 4294967294, %s1543_s12  }
  0x16   : > { %2031 = sst [smem:[#allocation20_spill]] %s1543_s12  ;;  %p60_p0 = scmp.ne.s32.totalorder %s1523_s29, %s1519_s28 }
  0x17   : > { %p61_p1 = scmp.eq.s32.totalorder %s1543_s12, 0  ;;  %p66_p2 = scmp.ne.s32.totalorder %s1519_s28, %s1515_s27 }
  0x18   : > { %p2010_p3 = scmp.eq.s32.totalorder %s1649_s13, 0  ;;  %p176_p4 = scmp.eq.s32.totalorder %s1649_s13, 3 }
  0x19   : > { %p1660_p5 = por %p61_p1, %p60_p0  ;;  %p182_p6 = scmp.eq.s32.totalorder %s2007_s14, 3 }
  0x1a   : > { %p1668_p7 = por %p2010_p3, %p66_p2  ;;  %p1672_p8 = por %p176_p4, %p60_p0 }
  0x1b   : > { %p1676_p9 = por %p182_p6, %p66_p2  ;;  %p1024_p10 = scmp.ge.s32.totalorder %s1543_s12, 1 }
  0x1c   : > { %s2033_s17 = scalar_select %p1668_p7, 1, 0 }
  0x1d   : > { %s2034_s18 = scalar_select %p1672_p8, 1, 0 }
  0x1e   : > { %s2035_s19 = scalar_select %p1676_p9, 1, 0 }
  0x1f   : > { %p273_p11 = scmp.lt.s32.totalorder %s1543_s12, 5  ;;  %s1545_s21 = smov [#allocation5]  }
  0x20   : > { %2036 = sst [smem:[#allocation21_spill]] %s2035_s19  ;;  %s291_s22 = sshll.u32 %s1545_s21, 4  ;;  %s292_s22 = int_to_ptr.vmem [resolvable:$true] %s291_s22 }
  0x21   : > { %p1682_p12 = pnand %p1024_p10, %p273_p11  ;;  %p1175_p0 = scmp.lt.s32.totalorder %s1543_s12, 4 }
  0x22   : > { %s2040_s3 = sld [smem:[#allocation26_spill]] }
  0x23   : > { %s2037_s20 = scalar_select %p1682_p12, 1, 0 }
  0x24   : > { %p1153_p13 = pneg %p1682_p12  ;;  %p1697_p2 = pnand %p1175_p0, %p1660_p5 }
  0x26   : > { %p1691_p1 = pnand %p1153_p13, %p2010_p3 }
  0x27   : > { %s2039_s24 = scalar_select %p1697_p2, 1, 0 }
  0x28   : > { %s1291_s14 = scalar_lea.hbm %s2040_s3, 3072  ;;  %p1293_p6 = pneg %p1691_p1 }
  0x29   : > { %p1292_p4 = scmp.ne.s32.totalorder %s2040_s3, %s1291_s14  ;;  %p1298_p13 = scmp.lt.u32.totalorder %s1291_s14, %s2040_s3 }
  0x2b   : > { %p1294_p10 = pnand %p1293_p6, %p1292_p4 }
  0x2d   : > { %p1295_p11 = pneg %p1294_p10 }
  0x2f   : > { %p1300_p5 = pnand %p1298_p13, %p1295_p11 }
  0x31   : > { %1303 = shalt.err (!%p1300_p5)
}
  0x32   : > { %s1304_s16 = scalar_lea.vmem %s292_s22, 3072  ;;  %p1312_p8 = scmp.lt.s32.totalorder %s292_s22, %s292_s22 }
  0x33   : > { %p1305_p0 = scmp.ne.s32.totalorder %s292_s22, %s1304_s16  ;;  %p1313_p7 = scmp.lt.s32.totalorder %s1304_s16, %s1304_s16 }
  0x35   : > { %p1307_p3 = pnand %p1305_p0, %p1293_p6  ;;  %p1314_p12 = por %p1313_p7, %p1312_p8 }
  0x37   : > { %p1308_p9 = pneg %p1307_p3 }
  0x39   : > { %p1315_p2 = pnand %p1314_p12, %p1308_p9 }
  0x3b   : > { %1318 = shalt.err (!%p1315_p2)
}
  0x3c   : > { %s1546_s15 = smov 192   ;;  %s1547_s27 = smov 12  }
  0x3d   : > { %1156 = dma.hbm_to_vmem [thread:$0]  (!%p1691_p1), %s2040_s3, 3072, %s292_s22, [#allocation6], %s1546_s15, %s1546_s15, %s1547_s27  }
  0x3e   : > { %s41_s25 = sadd.s32 1, %s1535_s10  ;;  %s44_s26 = sadd.s32 1, %s1539_s11 }
  0x3f   : > { %p42_p3 = scmp.ge.s32.totalorder %s41_s25, 2  ;;  %s308_s21 = sand.u32 1, %s1523_s29  }
  0x40   : > { %s1088_s16 = sshll.u32 %s1535_s10, 2  ;;  %s1027_s23 = sshll.u32 %s308_s21, 4 }
  0x41   : > { %s2072_s25 = smov (%p42_p3, %s41_s25), 0  ;;  %s2074_s26 = smov (!%p42_p3, %s44_s26), %s1539_s11 }
  0x42   : > { %2041 = sst [smem:[#allocation22_spill]] %s2072_s25  ;;  %s48_s12 = ssub.s32 %s1535_s10, %s2072_s25 }
  0x43   : > { %p46_p7 = scmp.ge.s32.totalorder %s2074_s26, 2  ;;  %s318_s7 = sadd.s32 %s1539_s11, %s1088_s16 }
  0x44   : > { %s1030_s22 = sshll.u32 %s318_s7, 7  ;;  %s312_s15 = scalar_lea.vmem [#allocation2], %s1027_s23 }
  0x45   : > { %s2076_s26 = smov (%p46_p7, %s2074_s26), 0  ;;  %s321_s27 = sshll.u32 %s312_s15, 4  ;;  %s1736_s27 = int_to_ptr.vmem [resolvable:$true] %s321_s27 }
  0x46   : > { %s49_s14 = ssub.s32 %s1539_s11, %s2076_s26  ;;  %s2042_s0 = sld [smem:[#allocation23_spill]] }
  0x47   : > { %s50_s25 = sor.u32 %s49_s14, %s48_s12  ;;  %s2043_s16 = sadd.s32 1, %s1523_s29 }
  0x48   : > { %p51_p8 = scmp.eq.s32.totalorder %s50_s25, 0  ;;  %s1743_s7 = scalar_lea.sflag [#allocation3], %s308_s21 }
  0x49   : > { %p2044_p12 = scmp.ne.s32.totalorder %s2039_s24, 0 }
  0x4a   : > { %s1741_s10 = scalar_select %p51_p8, %s1523_s29, %s2043_s16  }
  0x4b   : > { %p1321_p1 = pneg %p2044_p12 }
  0x4c   : > { %s1734_s6 = scalar_lea.hbm %s2042_s0, %s1030_s22  ;;  %s1324_s12 = scalar_lea.hbm %s2042_s0, 1024 }
  0x4d   : > { %s1319_s23 = scalar_lea.hbm %s1734_s6, 256  ;;  %p1325_p6 = scmp.lt.u32.totalorder %s1734_s6, %s2042_s0 }
  0x4e   : > { %p1320_p9 = scmp.ne.s32.totalorder %s1734_s6, %s1319_s23  ;;  %p1326_p10 = scmp.lt.u32.totalorder %s1324_s12, %s1319_s23 }
  0x4f   : > { %p1328_p13 = scmp.lt.u32.totalorder %s1319_s23, %s1734_s6 }
  0x50   : > { %p1322_p2 = pnand %p1321_p1, %p1320_p9  ;;  %p1327_p11 = por %p1326_p10, %p1325_p6 }
  0x52   : > { %p1323_p4 = pneg %p1322_p2  ;;  %p1329_p5 = por %p1328_p13, %p1327_p11 }
  0x54   : > { %p1330_p0 = pnand %p1329_p5, %p1323_p4 }
  0x56   : > { %1333 = shalt.err (!%p1330_p0)
}
  0x57   : > { %s1334_s25 = scalar_lea.vmem %s1736_s27, 256  ;;  %s1548_s21 = smov [#allocation2]  }
  0x58   : > { %p1335_p3 = scmp.ne.s32.totalorder %s1736_s27, %s1334_s25  ;;  %s1339_s19 = sshll.u32 %s1548_s21, 4  ;;  %s1340_s19 = int_to_ptr.vmem [resolvable:$false] %s1339_s19 }
  0x59   : > { %s1341_s16 = scalar_lea.vmem %s1340_s19, 512  ;;  %p1342_p9 = scmp.lt.s32.totalorder %s1736_s27, %s1340_s19 }
  0x5a   : > { %p1337_p7 = pnand %p1335_p3, %p1321_p1  ;;  %p1343_p2 = scmp.lt.s32.totalorder %s1341_s16, %s1334_s25 }
  0x5c   : > { %p1338_p8 = pneg %p1337_p7  ;;  %p1344_p6 = por %p1343_p2, %p1342_p9 }
  0x5e   : > { %p1345_p10 = pnand %p1344_p6, %p1338_p8 }
  0x60   : > { %1348 = shalt.err (!%p1345_p10)
}
  0x61   : > { %s1549_s23 = smov 256   ;;  %s1550_s3 = smov 128  }
  0x62   : > { %s1551_s22 = smov 8   ;;  %p2045_p1 = scmp.ne.s32.totalorder %s2037_s20, 0 }
  0x63   : > { %1160 = dma.hbm_to_vmem [thread:$0]  (!%p2044_p12), %s1734_s6, 256, %s1736_s27, %s1743_s7, %s1549_s23, %s1550_s3, %s1551_s22  }
  0x64   : > { %333 = sbr.rel (%p2045_p1) target bundleno = 714 (0x2ca), region = 40  ;;  %s1774_s12 = sand.u32 (!%p2045_p1), 1, %s1519_s28  }
  0x65   : > { %s1032_s15 = sshll.u32 (!%p2045_p1), %s1774_s12, 4  ;;  %s336_s14 = scalar_lea.sflag (!%p2045_p1), [#allocation3], %s1774_s12 }
  0x66   : > { %s339_s25 = scalar_lea.vmem (!%p2045_p1), [#allocation2], %s1032_s15  ;;  %p2046_p4 = scmp.ne.s32.totalorder (!%p2045_p1), %s2033_s17, 0 }
  0x6b   : > { %1494 = dma.done.wait (%p2046_p4), %s336_s14, 256  }
  0x6c   : > { %1496 = vsyncadd (%p2046_p4), %s336_s14, 4294967040  ;;  %p2047_p12 = scmp.eq.s32.totalorder %s1649_s13, 0 }
  0x6e   : > { %1498 = dma.done.wait (%p2047_p12), [#allocation6], 3072   ;;  %p2048_p11 = pmov %p2047_p12 }
  0x6f   : > { %v397_v0 = vld [vmem:[%s339_s25] sm:$0xff]  ;;  %v398_v1 = vld [vmem:[%s339_s25 + $0x8] sm:$0xff]  ;;  %v1552_v4 = vmov 0.0   ;;  %v1553_v30 = vmov 0   ;;  %vm1554_vm0 = vmmov 0   ;;  %s2049_s1 = sld [smem:[#allocation24_spill]] }
  0x70   : > { %1500 = vsyncadd (%p2048_p11), [#allocation6], 4294964224  ;;  %401 = vadd.xlane.f32.xlu0 %v397_v0  ;;  %v1255_v2 = vld [vmem:[#allocation5 + $0x4] ss:$12 sps:$4 sm:$0xff]   ;;  %v1257_v3 = vld [vmem:[#allocation5] ss:$12 sps:$4 sm:$0xff]   ;;  %1119 = vmatprep.subr.bf16.mxu1 %v1552_v4 }
  0x71   : > { %v1258_v5 = vld [vmem:[#allocation5 + $0x8] ss:$12 sps:$4 sm:$0xff]   ;;  %620 = vmatprep.subr.bf16.mxu0 %v1255_v2  ;;  %v1261_v15 = vld [vmem:[#allocation5 + $0x18] ss:$12 sps:$4 sm:$0xff]   ;;  %v1262_v16 = vld [vmem:[#allocation5 + $0x20] ss:$12 sps:$4 sm:$0xff]   ;;  %652 = vmatprep.mubr.bf16.mxu0 %v1553_v30 }
  0x72   : > { %v1259_v6 = vld [vmem:[#allocation5 + $0x1c] ss:$12 sps:$4 sm:$0xff]   ;;  %621 = vmatpush1.bf16.msra.mxu0 %v1257_v3  ;;  %1120 = vmatpush3.bf16.msra.mxu1 %v1258_v5  ;;  %v1263_v17 = vld [vmem:[#allocation5 + $0x34] ss:$12 sps:$4 sm:$0xff]   ;;  %v1266_v19 = vld [vmem:[#allocation5 + $0x38] ss:$12 sps:$4 sm:$0xff]  }
  0x73   : > { %622 = vmatprep.subr.bf16.mxu0 %v1259_v6  ;;  %1121 = vmatprep.subr.bf16.mxu1 %v1552_v4  ;;  %v1265_v18 = vld [vmem:[#allocation5 + $0x30] ss:$12 sps:$4 sm:$0xff]   ;;  %v1267_v20 = vld [vmem:[#allocation5 + $0x4c] ss:$12 sps:$4 sm:$0xff]   ;;  %v1269_v21 = vld [vmem:[#allocation5 + $0x48] ss:$12 sps:$4 sm:$0xff]  }
  0x74   : > { %403 = vadd.xlane.f32.xlu0 %v398_v1  ;;  %v1270_v22 = vld [vmem:[#allocation5 + $0x50] ss:$12 sps:$4 sm:$0xff]   ;;  %v1273_v24 = vld [vmem:[#allocation5 + $0x60] ss:$12 sps:$4 sm:$0xff]   ;;  %v1274_v25 = vld [vmem:[#allocation5 + $0x68] ss:$12 sps:$4 sm:$0xff]   ;;  %1135 = vmatprep.mubr.msk.bf16.mxu1 %vm1554_vm0, %v1552_v4 }
  0x75   : > { %v1271_v23 = vld [vmem:[#allocation5 + $0x64] ss:$12 sps:$4 sm:$0xff]   ;;  %v1275_v26 = vld [vmem:[#allocation5 + $0x7c] ss:$12 sps:$4 sm:$0xff]   ;;  %v1278_v28 = vld [vmem:[#allocation5 + $0x80] ss:$12 sps:$4 sm:$0xff]  }
  0x76   : > { %623 = vmatpush1.bf16.msra.mxu0 %v1261_v15  ;;  %1122 = vmatpush3.bf16.msra.mxu1 %v1262_v16  ;;  %v1277_v27 = vld [vmem:[#allocation5 + $0x78] ss:$12 sps:$4 sm:$0xff]   ;;  %v1279_v29 = vld [vmem:[#allocation5 + $0x94] ss:$12 sps:$4 sm:$0xff]   ;;  %v1281_v31 = vld [vmem:[#allocation5 + $0x90] ss:$12 sps:$4 sm:$0xff]  }
  0x77   : > { %1123 = vmatprep.subr.bf16.mxu1 %v1552_v4  ;;  %624 = vmatprep.subr.bf16.mxu0 %v1263_v17  ;;  %v1282_v32 = vld [vmem:[#allocation5 + $0x98] ss:$12 sps:$4 sm:$0xff]   ;;  %v1285_v34 = vld [vmem:[#allocation5 + $0xa8] ss:$12 sps:$4 sm:$0xff]   ;;  %v1286_v35 = vld [vmem:[#allocation5 + $0xb0] ss:$12 sps:$4 sm:$0xff]  }
  0x78   : > { %v1283_v33 = vld [vmem:[#allocation5 + $0xac] ss:$12 sps:$4 sm:$0xff]   ;;  %v1038_v43 = vld [vmem:[%s2049_s1] ss:$0 sm:$0xff]  ;;  %s2050_s2 = sld [smem:[#allocation25_spill]]  ;;  %s369_s27 = scalar_lea.vmem [#allocation7], %s1032_s15 }
  0x79   : > { %s1074_s7 = sshll.u32 %s1527_s30, 1  ;;  %s1075_s21 = sshll.u32 %s1531_s9, 2 }
  0x7a   : > { %625 = vmatpush1.bf16.msra.mxu0 %v1265_v18  ;;  %1124 = vmatpush3.bf16.msra.mxu1 %v1266_v19  ;;  %s767_s19 = sshll.u32 %s369_s27, 4  ;;  %s1817_s16 = sadd.s32 %s1075_s21, %s1074_s7  ;;  %s1819_s19 = int_to_ptr.vmem [resolvable:$true] %s767_s19 }
  0x7b   : > { %1125 = vmatprep.subr.bf16.mxu1 %v1552_v4  ;;  %626 = vmatprep.subr.bf16.mxu0 %v1267_v20  ;;  %s1076_s23 = sshll.u32 %s1817_s16, 7  ;;  %s737_s14 = scalar_lea.sflag [#allocation4], %s1774_s12 }
  0x7c   : > { %s1825_s15 = scalar_lea.hbm %s2003_s5, %s1076_s23  ;;  %s1349_s25 = scalar_lea.vmem %s1819_s19, 256 }
  0x7d   : > { %p1350_p13 = scmp.ne.s32.totalorder %s1819_s19, %s1349_s25  ;;  %p2051_p5 = scmp.ne.s32.totalorder %s2034_s18, 0 }
  0x7e   : > { %627 = vmatpush1.bf16.msra.mxu0 %v1269_v21  ;;  %1126 = vmatpush3.bf16.msra.mxu1 %v1270_v22  ;;  %v1039_v45 = vld [vmem:[%s2050_s2] ss:$0 sm:$0xff]  ;;  %s1555_s30 = smov [#allocation7]  }
  0x7f   : > { %1127 = vmatprep.subr.bf16.mxu1 %v1552_v4  ;;  %628 = vmatprep.subr.bf16.mxu0 %v1271_v23  ;;  %p1351_p0 = pnand %p1350_p13, %p2051_p5  ;;  %s1353_s9 = sshll.u32 %s1555_s30, 4  ;;  %s1354_s9 = int_to_ptr.vmem [resolvable:$false] %s1353_s9 }
  0x80   : > { %s1355_s6 = scalar_lea.vmem %s1354_s9, 512  ;;  %p1356_p7 = scmp.lt.s32.totalorder %s1819_s19, %s1354_s9 }
  0x81   : > { %p1352_p3 = pneg %p1351_p0  ;;  %p1357_p8 = scmp.lt.s32.totalorder %s1355_s6, %s1349_s25 }
  0x82   : > { %629 = vmatpush1.bf16.msra.mxu0 %v1273_v24  ;;  %1128 = vmatpush3.bf16.msra.mxu1 %v1274_v25 }
  0x83   : > { %630 = vmatprep.subr.bf16.mxu0 %v1275_v26  ;;  %1129 = vmatprep.subr.bf16.mxu1 %v1552_v4  ;;  %p1358_p9 = por %p1357_p8, %p1356_p7 }
  0x85   : > { %p1359_p2 = pnand %p1358_p9, %p1352_p3 }
  0x86   : > { %631 = vmatpush1.bf16.msra.mxu0 %v1277_v27  ;;  %1130 = vmatpush3.bf16.msra.mxu1 %v1278_v28 }
  0x87   : > { %632 = vmatprep.subr.bf16.mxu0 %v1279_v29  ;;  %1131 = vmatprep.subr.bf16.mxu1 %v1552_v4 }
  0x8a   : > { %633 = vmatpush1.bf16.msra.mxu0 %v1281_v31  ;;  %1132 = vmatpush3.bf16.msra.mxu1 %v1282_v32 }
  0x8b   : > { %634 = vmatprep.subr.bf16.mxu0 %v1283_v33  ;;  %1133 = vmatprep.subr.bf16.mxu1 %v1552_v4 }
  0x8e   : > { %635 = vmatpush1.bf16.msra.mxu0 %v1285_v34  ;;  %1134 = vmatpush3.bf16.msra.mxu1 %v1286_v35 }
  0xfd   : > { %v402_v7 = vpop.xlane.xlu0 %401 }
  0xfe   : > { %v406_v8 = vmul.f32 0.0078125, %v402_v7 }
 0x100   : > { %v1790_v9 = vsub.f32 %v397_v0, %v406_v8 }
 0x101   : > { %v404_v10 = vpop.xlane.xlu0 %403 }
 0x102   : > { %v407_v11 = vmul.f32 0.0078125, %v404_v10  ;;  %v410_v12 = vmul.f32 %v1790_v9, %v1790_v9 }
 0x104   : > { %v1794_v13 = vsub.f32 %v398_v1, %v407_v11  ;;  %412 = vadd.xlane.f32.xlu1 %v410_v12 }
 0x106   : > { %v411_v14 = vmul.f32 %v1794_v13, %v1794_v13 }
 0x108   : > { %414 = vadd.xlane.f32.xlu1 %v411_v14 }
 0x191   : > { %v413_v36 = vpop.xlane.xlu1 %412 }
 0x192   : > { %v416_v37 = vmul.f32 0.0078125, %v413_v36 }
 0x194   : > { %v418_v38 = vadd.f32 1e-05, %v416_v37 }
 0x195   : > { %v415_v39 = vpop.xlane.xlu1 %414 }
 0x196   : > { %1287 = vrsqrt.f32 %v418_v38  ;;  %v417_v40 = vmul.f32 0.0078125, %v415_v39 }
 0x198   : > { %v419_v41 = vadd.f32 1e-05, %v417_v40 }
 0x19a   : > { %1289 = vrsqrt.f32 %v419_v41 }
 0x1a0   : > { %v1288_v42 = vpop.eup %1287 }
 0x1a1   : > { %v422_v44 = vmul.f32 %v1288_v42, %v1790_v9 }
 0x1a3   : > { %v430_v46 = vmul.f32 %v1038_v43, %v422_v44 }
 0x1a4   : > { %v1290_v47 = vpop.eup %1289 }
 0x1a5   : > { %v423_v48 = vmul.f32 %v1290_v47, %v1794_v13  ;;  %v438_v49 = vadd.f32 %v1039_v45, %v430_v46 }
 0x1a7   : > { %v431_v50 = vmul.f32 %v1038_v43, %v423_v48  ;;  %440 = vst [vmem:[%s369_s27] sm:$0xff] %v438_v49 }
 0x1a9   : > { %v439_v51 = vadd.f32 %v1039_v45, %v431_v50 }
 0x1ab   : > { %441 = vst [vmem:[%s369_s27 + $0x8] sm:$0xff] %v439_v51  ;;  %v442_v52 = vpack.c.bf16 %v439_v51, %v438_v49 }
 0x1ad   : > { %653 = vmatmul.mubr.bf16.vlgmr.msra.gmra.mrb[0].mxu0 %v442_v52  ;;  %1136 = vmatmul.mubr.bf16.vlgmr.msra.gmra.mrb[0].mxu1 %v442_v52 }
 0x1ae   : > { %1362 = shalt.err (!%p1359_p2)
}
 0x1af   : > { %s1363_s17 = scalar_lea.hbm %s1825_s15, 256  ;;  %s1367_s27 = scalar_lea.hbm %s2003_s5, 1024 }
 0x1b0   : > { %p1364_p6 = scmp.ne.s32.totalorder %s1825_s15, %s1363_s17  ;;  %p1368_p4 = scmp.lt.u32.totalorder %s1825_s15, %s2003_s5 }
 0x1b1   : > { %p1369_p12 = scmp.lt.u32.totalorder %s1367_s27, %s1363_s17  ;;  %p1371_p13 = scmp.lt.u32.totalorder %s1363_s17, %s1825_s15 }
 0x1b2   : > { %p1365_p10 = pnand %p1364_p6, %p2051_p5 }
 0x1b3   : > { %p1370_p11 = por %p1369_p12, %p1368_p4 }
 0x1b4   : > { %p1366_p1 = pneg %p1365_p10 }
 0x1b5   : > { %p1372_p0 = por %p1371_p13, %p1370_p11 }
 0x1b7   : > { %p1373_p3 = pnand %p1372_p0, %p1366_p1 }
 0x1b9   : > { %1376 = shalt.err (!%p1373_p3)
}
 0x1ba   : > { %s1556_s23 = smov 128   ;;  %s1557_s3 = smov 8   ;;  %v477_v53 = vlaneseq }
 0x1bb   : > { %1145 = dma.vmem_to_hbm [thread:$0]  (%p2051_p5), %s1819_s19, 256, %s1825_s15, %s737_s14, %s1556_s23, %s1556_s23, %s1557_s3  }
 0x1bc   : > { %v478_v54 = vshrl.u32 %v477_v53, 7  ;;  %s1852_s22 = sshll.u32 %s1774_s12, 3  ;;  %s2052_s4 = sld [smem:[#allocation27_spill]] }
 0x1bd   : > { %s2021_s9 = scalar_lea.vmem [#allocation8], %s1852_s22  ;;  %s390_s15 = scalar_lea.vmem [#allocation11], %s1852_s22 }
 0x1be   : > { %v479_v55 = vsub.s32 0, %v478_v54  ;;  %v487_v57 = vsub.s32 2, %v478_v54  ;;  %v483_v58 = vsub.s32 1, %v478_v54  ;;  %s785_s19 = sshll.u32 %s2021_s9, 4  ;;  %s821_s14 = sshll.u32 %s390_s15, 4  ;;  %s1862_s19 = int_to_ptr.vmem [resolvable:$true] %s785_s19  ;;  %s1865_s14 = int_to_ptr.vmem [resolvable:$true] %s821_s14 }
 0x1bf   : > { %s1079_s17 = sshll.u32 %s1817_s16, 6  ;;  %s383_s20 = scalar_lea.vmem [#allocation10], %s1852_s22 }
 0x1c0   : > { %s803_s24 = sshll.u32 %s383_s20, 4  ;;  %s1871_s7 = scalar_lea.hbm %s2006_s8, %s1079_s17  ;;  %s1873_s24 = int_to_ptr.vmem [resolvable:$true] %s803_s24 }
 0x1c1   : > { %s2053_s3 = sld [smem:[#allocation28_spill]]  ;;  %s2054_s9 = sld [smem:[#allocation29_spill]] }
 0x1c2   : > { %v475_v56 = vld [vmem:[%s2052_s4] sm:$0x7]  ;;  %s752_s27 = scalar_lea.sflag [#allocation12], %s1774_s12  ;;  %s1377_s16 = scalar_lea.vmem %s1865_s14, 128 }
 0x1c3   : > { %v480_v59 = vrot.slane %v475_v56, %v479_v55  ;;  %v488_v60 = vrot.slane %v475_v56, %v487_v57  ;;  %v484_v63 = vrot.slane %v475_v56, %v483_v58  ;;  %p1378_p7 = scmp.ne.s32.totalorder %s1865_s14, %s1377_s16  ;;  %s1558_s2 = smov [#allocation11]  }
 0x1c4   : > { %s1381_s4 = sshll.u32 %s1558_s2, 4  ;;  %s1382_s4 = int_to_ptr.vmem [resolvable:$false] %s1381_s4 }
 0x1c5   : > { %p1379_p8 = pnand %p1378_p7, %p2051_p5  ;;  %p1384_p2 = scmp.lt.s32.totalorder %s1865_s14, %s1382_s4 }
 0x1c7   : > { %s1878_s25 = scalar_lea.hbm %s2053_s3, %s1079_s17  ;;  %s2055_s0 = smov %s2054_s9 }
 0x1c8   : > { %s1883_s1 = scalar_lea.hbm %s2054_s9, %s1079_s17  ;;  %p1380_p9 = pneg %p1379_p8 }
 0x280   : > { %v654_v61 = vpop.f32.mrb[0].mxu0  ;;  %v697_v62 = vpop.f32.mrb[0].mxu1 }
 0x281   : > { %v655_v0 = vadd.f32 %v654_v61, %v480_v59  ;;  %v656_v1 = vpop.f32.mrb[1].mxu0  ;;  %v1137_v2 = vpop.f32.mrb[1].mxu1  ;;  %v698_v5 = vadd.f32 %v697_v62, %v488_v60 }
 0x282   : > { %v658_v3 = vpop.f32.mrb[2].mxu0  ;;  %v700_v4 = vpop.f32.mrb[2].mxu1  ;;  %v657_v10 = vadd.f32 %v656_v1, %v484_v63 }
 0x283   : > { %v659_v6 = vadd.f32 %v658_v3, %v480_v59  ;;  %v701_v7 = vadd.f32 %v700_v4, %v488_v60  ;;  %v660_v8 = vpop.f32.mrb[3].mxu0  ;;  %v1138_v9 = vpop.f32.mrb[3].mxu1  ;;  %v704_v12 = vmul.f32 0.17677669, %v655_v0 }
 0x284   : > { %v661_v11 = vadd.f32 %v660_v8, %v484_v63 }
 0x285   : > { %v705_v13 = vmul.f32 0.17677669, %v659_v6  ;;  %v1108_v14 = vpack.c.bf16 %v701_v7, %v698_v5 }
 0x286   : > { %v1103_v15 = vpack.c.bf16 %v661_v11, %v657_v10 }
 0x287   : > { %v1098_v16 = vpack.c.bf16 %v705_v13, %v704_v12  ;;  %1109 = vst [vmem:[%s390_s15] sm:$0xff] %v1108_v14   ;;  %s1383_s15 = scalar_lea.vmem %s1382_s4, 256 }
 0x288   : > { %1104 = vst [vmem:[%s383_s20] sm:$0xff] %v1103_v15   ;;  %p1385_p6 = scmp.lt.s32.totalorder %s1383_s15, %s1377_s16 }
 0x28a   : > { %p1386_p10 = por %p1385_p6, %p1384_p2 }
 0x28c   : > { %p1387_p1 = pnand %p1386_p10, %p1380_p9 }
 0x28e   : > { %1390 = shalt.err (!%p1387_p1)
}
 0x28f   : > { %s1391_s9 = scalar_lea.hbm %s1871_s7, 128  ;;  %s1395_s2 = scalar_lea.hbm %s2006_s8, 512 }
 0x290   : > { %p1392_p4 = scmp.ne.s32.totalorder %s1871_s7, %s1391_s9  ;;  %p1396_p13 = scmp.lt.u32.totalorder %s1871_s7, %s2006_s8 }
 0x291   : > { %p1397_p0 = scmp.lt.u32.totalorder %s1395_s2, %s1391_s9  ;;  %p1399_p7 = scmp.lt.u32.totalorder %s1391_s9, %s1871_s7 }
 0x292   : > { %p1393_p12 = pnand %p1392_p4, %p2051_p5 }
 0x293   : > { %p1398_p3 = por %p1397_p0, %p1396_p13 }
 0x294   : > { %p1394_p11 = pneg %p1393_p12 }
 0x295   : > { %p1400_p8 = por %p1399_p7, %p1398_p3 }
 0x297   : > { %p1401_p9 = pnand %p1400_p8, %p1394_p11 }
 0x299   : > { %1404 = shalt.err (!%p1401_p9)
}
 0x29a   : > { %s1559_s21 = smov 64   ;;  %s1560_s23 = smov 4  }
 0x29b   : > { %1148 = dma.vmem_to_hbm [thread:$0]  (%p2051_p5), %s1865_s14, 128, %s1871_s7, %s752_s27, %s1559_s21, %s1559_s21, %s1560_s23  }
 0x29c   : > { %s2056_s30 = scalar_lea.vmem [#allocation8], %s1852_s22  ;;  %s2057_s16 = sand.u32 1, %s1649_s13  }
 0x29d   : > { %1099 = vst [vmem:[%s2056_s30] sm:$0xff] %v1098_v16   ;;  %s1916_s15 = scalar_lea.sflag [#allocation9], %s2057_s16  ;;  %s1405_s9 = scalar_lea.vmem %s1862_s19, 128 }
 0x29e   : > { %p1406_p2 = scmp.ne.s32.totalorder %s1862_s19, %s1405_s9  ;;  %s1561_s6 = smov [#allocation8]  }
 0x29f   : > { %s1409_s17 = sshll.u32 %s1561_s6, 4  ;;  %s1410_s17 = int_to_ptr.vmem [resolvable:$false] %s1409_s17 }
 0x2a0   : > { %p1407_p6 = pnand %p1406_p2, %p2051_p5  ;;  %s1411_s2 = scalar_lea.vmem %s1410_s17, 256 }
 0x2a1   : > { %p1412_p1 = scmp.lt.s32.totalorder %s1862_s19, %s1410_s17  ;;  %p1413_p4 = scmp.lt.s32.totalorder %s1411_s2, %s1405_s9 }
 0x2a2   : > { %p1408_p10 = pneg %p1407_p6 }
 0x2a3   : > { %p1414_p12 = por %p1413_p4, %p1412_p1 }
 0x2a5   : > { %p1415_p11 = pnand %p1414_p12, %p1408_p10 }
 0x2a7   : > { %1418 = shalt.err (!%p1415_p11)
}
 0x2a8   : > { %s1419_s13 = scalar_lea.hbm %s1878_s25, 128  ;;  %s1423_s14 = scalar_lea.hbm %s2053_s3, 512 }
 0x2a9   : > { %p1420_p13 = scmp.ne.s32.totalorder %s1878_s25, %s1419_s13  ;;  %p1424_p7 = scmp.lt.u32.totalorder %s1878_s25, %s2053_s3 }
 0x2aa   : > { %p1425_p8 = scmp.lt.u32.totalorder %s1423_s14, %s1419_s13  ;;  %p1427_p2 = scmp.lt.u32.totalorder %s1419_s13, %s1878_s25 }
 0x2ab   : > { %p1421_p0 = pnand %p1420_p13, %p2051_p5 }
 0x2ac   : > { %p1426_p9 = por %p1425_p8, %p1424_p7 }
 0x2ad   : > { %p1422_p3 = pneg %p1421_p0 }
 0x2ae   : > { %p1428_p6 = por %p1427_p2, %p1426_p9 }
 0x2b0   : > { %p1429_p10 = pnand %p1428_p6, %p1422_p3 }
 0x2b2   : > { %1432 = shalt.err (!%p1429_p10)
}
 0x2b3   : > { %1146 = dma.vmem_to_hbm [thread:$0]  (%p2051_p5), %s1862_s19, 128, %s1878_s25, %s1916_s15, %s1559_s21, %s1559_s21, %s1560_s23  }
 0x2b4   : > { %s1433_s20 = scalar_lea.vmem %s1873_s24, 128  ;;  %s1562_s4 = smov [#allocation10]  }
 0x2b5   : > { %p1434_p1 = scmp.ne.s32.totalorder %s1873_s24, %s1433_s20  ;;  %s1437_s30 = sshll.u32 %s1562_s4, 4  ;;  %s1438_s30 = int_to_ptr.vmem [resolvable:$false] %s1437_s30 }
 0x2b6   : > { %s1439_s16 = scalar_lea.vmem %s1438_s30, 256  ;;  %p1440_p11 = scmp.lt.s32.totalorder %s1873_s24, %s1438_s30 }
 0x2b7   : > { %p1435_p4 = pnand %p1434_p1, %p2051_p5  ;;  %p1441_p13 = scmp.lt.s32.totalorder %s1439_s16, %s1433_s20 }
 0x2b9   : > { %p1436_p12 = pneg %p1435_p4  ;;  %p1442_p0 = por %p1441_p13, %p1440_p11 }
 0x2bb   : > { %p1443_p3 = pnand %p1442_p0, %p1436_p12 }
 0x2bd   : > { %1446 = shalt.err (!%p1443_p3)
}
 0x2be   : > { %s1447_s19 = scalar_lea.hbm %s1883_s1, 128  ;;  %s1451_s6 = scalar_lea.hbm %s2055_s0, 512 }
 0x2bf   : > { %p1448_p7 = scmp.ne.s32.totalorder %s1883_s1, %s1447_s19  ;;  %p1452_p2 = scmp.lt.u32.totalorder %s1883_s1, %s2055_s0 }
 0x2c0   : > { %p1453_p6 = scmp.lt.u32.totalorder %s1451_s6, %s1447_s19  ;;  %p1455_p1 = scmp.lt.u32.totalorder %s1447_s19, %s1883_s1 }
 0x2c1   : > { %p1449_p8 = pnand %p1448_p7, %p2051_p5 }
 0x2c2   : > { %p1454_p10 = por %p1453_p6, %p1452_p2 }
 0x2c3   : > { %p1450_p9 = pneg %p1449_p8 }
 0x2c4   : > { %p1456_p4 = por %p1455_p1, %p1454_p10 }
 0x2c6   : > { %p1457_p12 = pnand %p1456_p4, %p1450_p9 }
 0x2c8   : > { %1460 = shalt.err (!%p1457_p12)
}
 0x2c9   : > { %1147 = dma.vmem_to_hbm [thread:$0]  (%p2051_p5), %s1873_s24, 128, %s1883_s1, %s1916_s15, %s1559_s21, %s1559_s21, %s1560_s23  }
 0x2ca PF: > { %s2058_s13 = sld [smem:[#allocation20_spill]]  ;;  %s2059_s12 = sld [smem:[#allocation18_spill]] }
 0x2cb   : > { %s2060_s22 = sld [smem:[#allocation21_spill]] }
 0x2d0   : > { %p1177_p11 = scmp.ge.s32.totalorder %s2058_s13, 2  ;;  %s836_s14 = sand.u32 1, %s2059_s12  }
 0x2d1   : > { %p2061_p13 = scmp.ne.s32.totalorder %s2060_s22, 0  ;;  %s837_s7 = scalar_lea.sflag [#allocation4], %s836_s14 }
 0x2d3   : > { %p1162_p0 = pnand %p1177_p11, %p2061_p13 }
 0x2d5   : > { %1502 = dma.done.wait (!%p1162_p0), %s837_s7, 256  }
 0x2d6   : > { %1504 = vsyncadd (!%p1162_p0), %s837_s7, 4294967040  ;;  %s2062_s18 = sadd.s32 4294967294, %s2058_s13  }
 0x2d7   : > { %s845_s27 = sand.u32 1, %s2062_s18  }
 0x2d8   : > { %s846_s20 = scalar_lea.sflag [#allocation9], %s845_s27 }
 0x2d9   : > { %1506 = dma.done.wait (!%p1162_p0), %s846_s20, 256  }
 0x2da   : > { %1508 = vsyncadd (!%p1162_p0), %s846_s20, 4294967040  ;;  %s864_s4 = scalar_lea.sflag [#allocation12], %s836_s14 }
 0x2db   : > { %1510 = dma.done.wait (!%p1162_p0), %s864_s4, 128  }
 0x2dc   : > { %1512 = vsyncadd (!%p1162_p0), %s864_s4, 4294967168  ;;  %s32_s12 = sadd.s32 1, %s2058_s13   ;;  %s2063_s30 = sld [smem:[#allocation19_spill]] }
 0x2dd   : > { %p29_p5 = scmp.ge.s32.totalorder %s32_s12, 6   ;;  %s2064_s1 = sld [smem:[#allocation22_spill]] }
 0x2de   : > { %s2065_s27 = smov %s1519_s28  ;;  %s2066_s28 = smov %s1523_s29 }
 0x2df   : > { %s2067_s29 = smov %s1741_s10  ;;  %s2068_s9 = smov %s1539_s11 }
 0x2e0   : > { %s2070_s11 = smov %s2076_s26  ;;  %31 = sbr.rel (!%p29_p5) target bundleno = 20 (0x14), region = 138 }
 0x2e3   : > { %s2069_s10 = smov %s2064_s1 }
 0x2e7   :  { %869 = vsyncpa [#allocation3], 1 }
 0x2e8   :  { %871 = vsyncpa [#allocation3 + $0x1], 1 }
 0x2e9   :  { %872 = vsyncpa [#allocation6], 1 }
 0x2ea   :  { %873 = vsyncpa [#allocation4], 1 }
 0x2eb   :  { %875 = vsyncpa [#allocation4 + $0x1], 1 }
 0x2ec   :  { %876 = vsyncpa [#allocation9], 1 }
 0x2ed   :  { %878 = vsyncpa [#allocation9 + $0x1], 1 }
 0x2ee   :  { %879 = vsyncpa [#allocation12], 1 }
 0x2ef   :  { %881 = vsyncpa [#allocation12 + $0x1], 1 }

</bundles_post_ra>
